<compile_context>
chip_gen: v7x
topology: tpu7x:2x2x1
jax: 0.10.0
libtpu: 0.0.40
codegen_flags: <defaults>
</compile_context>

<pallas_src>
import functools

import jax
import jax.numpy as jnp
from jax.experimental import pallas as pl
from jax.experimental.pallas import tpu as pltpu

_NEG_BIG = -1e30  # plain Python float ("-inf" stand-in), NOT a jnp scalar


def _round_up(x, m):
    return (x + m - 1) // m * m


def _hard_distill_kernel(x_ref, w_ref, b_ref, cls_ref, dist_ref, labels_ref,
                         loss_ref, acc_ref, *, ratio, batch, num_classes):
    # x_ref      : (B_pad, tk)    f32/bf16  streamed slice of flattened inputs
    # w_ref      : (tk, K_pad)    f32/bf16  streamed slice of teacher weight
    # b_ref      : (1, K_pad)     f32       teacher bias (resident)
    # cls_ref    : (B_pad, K_pad) f32       student cls-head logits (resident)
    # dist_ref   : (B_pad, K_pad) f32       student dist-head logits (resident)
    # labels_ref : (B_pad, 1)     i32       ground-truth labels (resident)
    # loss_ref   : (1, 1)         f32       scalar output (SMEM)
    # acc_ref    : (B_pad, K_pad) f32       teacher-logit accumulator (VMEM)
    k = pl.program_id(0)

    @pl.when(k == 0)
    def _init():
        acc_ref[...] = jnp.zeros_like(acc_ref)

    # ---- hot loop: single MXU push + f32 accumulate -------------------------
    acc_ref[...] += jnp.dot(x_ref[...], w_ref[...],
                            preferred_element_type=jnp.float32)

    # ---- epilogue: runs exactly once, on the last reduction step ------------
    # TODO(synk): for very large B_pad*K_pad, tile this epilogue over B rows
    # (fori_loop) to cap the (B_pad, K_pad) f32 temporaries it materializes.
    @pl.when(k == pl.num_programs(0) - 1)
    def _finalize():
        b_pad, k_pad = acc_ref.shape
        t_logits = acc_ref[...] + b_ref[...]                      # (B_pad, K_pad)

        col = jax.lax.broadcasted_iota(jnp.int32, (b_pad, k_pad), 1)
        col_valid = col < num_classes

        # teacher_labels = argmax over valid classes (first-max tie-break)
        t_masked = jnp.where(col_valid, t_logits, _NEG_BIG)
        t_max = jnp.max(t_masked, axis=1, keepdims=True)
        teacher_labels = jnp.min(
            jnp.where(t_masked == t_max, col, k_pad), axis=1, keepdims=True)

        row = jax.lax.broadcasted_iota(jnp.int32, (b_pad, 1), 0)
        row_valid = (row < batch).astype(jnp.float32)

        def ce_rows(logits, lab_col):
            lg = jnp.where(col_valid, logits, _NEG_BIG)
            m = jnp.max(lg, axis=1, keepdims=True)
            lse = m + jnp.log(jnp.sum(jnp.exp(lg - m), axis=1, keepdims=True))
            picked = jnp.sum(jnp.where(col == lab_col, lg, 0.0),
                             axis=1, keepdims=True)
            return lse - picked                                   # (B_pad, 1)

        base_rows = ce_rows(cls_ref[...], labels_ref[...])
        teach_rows = ce_rows(dist_ref[...], teacher_labels)

        inv_b = 1.0 / batch
        base_loss = jnp.sum(base_rows * row_valid) * inv_b
        teacher_loss = jnp.sum(teach_rows * row_valid) * inv_b
        loss_ref[0, 0] = ratio * base_loss + (1.0 - ratio) * teacher_loss


def prepare_teacher(teacher_w, teacher_b, *, tk=2048, weight_dtype=jnp.bfloat16):
    """Pad + cast the constant teacher linear classifier ONCE (outside the loss).

    teacher_w: (D, K), teacher_b: (K,).  Do this at setup time so the big
    weight is not re-copied in HBM on every loss call.
    """
    D, K = teacher_w.shape
    tk = _round_up(max(128, min(int(tk), _round_up(D, 128))), 128)
    d_pad = _round_up(D, tk)
    k_pad = _round_up(K, 128)
    if (d_pad, k_pad) == (D, K):
        w_p = teacher_w.astype(weight_dtype)            # cast only, no pad copy
    else:
        w_p = (jnp.zeros((d_pad, k_pad), weight_dtype)
               .at[:D, :K].set(teacher_w.astype(weight_dtype)))
    b_p = jnp.zeros((1, k_pad), jnp.float32).at[0, :K].set(
        teacher_b.astype(jnp.float32))
    return {"w": w_p, "b": b_p, "D": D, "K": K, "tk": tk,
            "d_pad": d_pad, "k_pad": k_pad, "weight_dtype": weight_dtype}


def hard_distillation_loss(inputs, outputs_cls, outputs_dist, labels, teacher,
                           ratio=0.5, *, vmem_limit_bytes=None):
    """inputs: NCHW [B,C,H,W]; outputs_*: [B,K]; labels: [B] int.

    `teacher` is the dict returned by prepare_teacher (a linear classifier over
    the flattened input, matching self.teacher(inputs) in the PyTorch module).
    """
    B = inputs.shape[0]
    K = teacher["K"]
    D, d_pad = teacher["D"], teacher["d_pad"]
    k_pad, tk = teacher["k_pad"], teacher["tk"]
    wdt = teacher["weight_dtype"]
    nk = d_pad // tk

    b_pad = _round_up(B, 8)

    # Per-call tensors only (cheap relative to W): cast/pad x, cls, dist, labels.
    x = inputs.reshape(B, -1).astype(wdt)                          # (B, D)
    if (b_pad, d_pad) != (B, D):
        x = jnp.zeros((b_pad, d_pad), wdt).at[:B, :D].set(x)
    cls_p = jnp.zeros((b_pad, k_pad), jnp.float32).at[:B, :K].set(
        outputs_cls.astype(jnp.float32))
    dist_p = jnp.zeros((b_pad, k_pad), jnp.float32).at[:B, :K].set(
        outputs_dist.astype(jnp.float32))
    lab_p = jnp.zeros((b_pad, 1), jnp.int32).at[:B, 0].set(
        labels.astype(jnp.int32))

    kernel = functools.partial(_hard_distill_kernel, ratio=float(ratio),
                               batch=B, num_classes=K)

    grid_spec = pltpu.PrefetchScalarGridSpec(
        num_scalar_prefetch=0,
        grid=(nk,),                                                # D reduction
        in_specs=[
            pl.BlockSpec((b_pad, tk), lambda k: (0, k)),           # x : stream D
            pl.BlockSpec((tk, k_pad), lambda k: (k, 0)),           # W : stream D
            # TODO(synk): the resident specs below could use
            # pipeline_mode=pl.Buffered(1) to drop their second VMEM buffer
            # (v7x headroom); left at the default for portability.
            pl.BlockSpec((1, k_pad), lambda k: (0, 0)),            # bias resident
            pl.BlockSpec((b_pad, k_pad), lambda k: (0, 0)),        # cls resident
            pl.BlockSpec((b_pad, k_pad), lambda k: (0, 0)),        # dist resident
            pl.BlockSpec((b_pad, 1), lambda k: (0, 0)),            # labels resident
        ],
        out_specs=pl.BlockSpec(memory_space=pltpu.MemorySpace.SMEM),
        scratch_shapes=[pltpu.VMEM((b_pad, k_pad), jnp.float32)],
    )

    elt = jnp.dtype(wdt).itemsize
    cost = pl.CostEstimate(
        flops=2 * b_pad * d_pad * k_pad,
        transcendentals=2 * b_pad * k_pad,
        bytes_accessed=elt * (d_pad * k_pad + b_pad * d_pad)
        + 4 * (3 * b_pad * k_pad + k_pad),
    )

    # TODO(synk): v7x dual-TensorCore — add a leading "parallel" grid axis
    # splitting K (or B) across cores; a single 1-D reduction grid uses one TC.
    loss = pl.pallas_call(
        kernel,
        grid_spec=grid_spec,
        out_shape=jax.ShapeDtypeStruct((1, 1), jnp.float32),
        compiler_params=pltpu.CompilerParams(
            dimension_semantics=("arbitrary",),                    # reduction axis
            vmem_limit_bytes=vmem_limit_bytes),
        cost_estimate=cost,
    )(x, teacher["w"], teacher["b"], cls_p, dist_p, lab_p)
    return loss[0, 0]


def _reference(inputs, outputs_cls, outputs_dist, labels, w, b, ratio=0.5,
               teacher_dtype=jnp.float32):
    B = inputs.shape[0]
    x = inputs.reshape(B, -1).astype(teacher_dtype)
    t = jnp.dot(x, w.astype(teacher_dtype),
                preferred_element_type=jnp.float32) + b
    t_lab = jnp.argmax(t, axis=1)

    def ce(logits, lab):
        lse = jax.scipy.special.logsumexp(logits, axis=1)
        picked = jnp.take_along_axis(logits, lab[:, None], axis=1)[:, 0]
        return jnp.mean(lse - picked)

    return ratio * ce(outputs_cls, labels) + (1 - ratio) * ce(outputs_dist, t_lab)


if __name__ == "__main__":
    key = jax.random.PRNGKey(0)
    B, C, H, W = 2, 4, 16, 16
    num_classes = 16
    D = C * H * W

    k1, k2, k3, k4, k5, k6 = jax.random.split(key, 6)
    inputs = jax.random.normal(k1, (B, C, H, W), dtype=jnp.float32)
    outputs_cls = jax.random.normal(k2, (B, num_classes), dtype=jnp.float32)
    outputs_dist = jax.random.normal(k3, (B, num_classes), dtype=jnp.float32)
    labels = jax.random.randint(k4, (B,), 0, num_classes, dtype=jnp.int32)

    # Deterministic synthetic teacher (linear classifier over flattened input).
    teacher_w = jax.random.normal(k5, (D, num_classes), dtype=jnp.float32) * 0.02
    teacher_b = jax.random.normal(k6, (num_classes,), dtype=jnp.float32) * 0.01

    # 1) f32-streamed path with tk=256 -> 4 reduction steps: exercises the
    #    pipelined accumulation; exact parity with the f32 reference.
    teacher_f32 = prepare_teacher(teacher_w, teacher_b, tk=256,
                                  weight_dtype=jnp.float32)
    loss_f32 = hard_distillation_loss(inputs, outputs_cls, outputs_dist,
                                      labels, teacher_f32, ratio=0.5)
    jax.block_until_ready(loss_f32)
    ref_f32 = _reference(inputs, outputs_cls, outputs_dist, labels,
                         teacher_w, teacher_b, ratio=0.5)
    assert jnp.allclose(loss_f32, ref_f32, atol=1e-4, rtol=1e-4), (loss_f32, ref_f32)

    # 2) default config: bf16-streamed operands (f32 accumulate), default tk.
    teacher_bf16 = prepare_teacher(teacher_w, teacher_b)
    loss_bf16 = hard_distillation_loss(inputs, outputs_cls, outputs_dist,
                                       labels, teacher_bf16, ratio=0.5)
    jax.block_until_ready(loss_bf16)
    ref_bf16 = _reference(inputs, outputs_cls, outputs_dist, labels,
                          teacher_w, teacher_b, ratio=0.5,
                          teacher_dtype=jnp.bfloat16)
    assert jnp.allclose(loss_bf16, ref_bf16, atol=5e-3, rtol=5e-3), (loss_bf16, ref_bf16)

    print("KERNEL_OK")
</pallas_src>

<mosaic_0001>
module attributes {stable_mosaic.version = 11 : i64} {
  func.func @_hard_distill_kernel(%arg0: i32, %arg1: memref<8x256xf32, #tpu.memory_space<vmem>>, %arg2: memref<256x128xf32, #tpu.memory_space<vmem>>, %arg3: memref<1x128xf32, #tpu.memory_space<vmem>>, %arg4: memref<8x128xf32, #tpu.memory_space<vmem>>, %arg5: memref<8x128xf32, #tpu.memory_space<vmem>>, %arg6: memref<8x1xi32, #tpu.memory_space<vmem>>, %arg7: memref<1x1xf32, #tpu.memory_space<smem>>, %arg8: memref<8x128xf32, #tpu.memory_space<vmem>>) attributes {dimension_semantics = [#tpu.dimension_semantics<arbitrary>], iteration_bounds = array<i64: 4>, scalar_prefetch = 0 : i64, scratch_operands = 1 : i64, tpu.core_type = #tpu.core_type<tc>, window_params = [{transform_indices = @transform_0, window_bounds = array<i64: 8, 256>}, {transform_indices = @transform_1, window_bounds = array<i64: 256, 128>}, {pipeline_mode = #tpu.pipeline_mode<synchronous>, transform_indices = @transform_2, window_bounds = array<i64: 1, 128>}, {pipeline_mode = #tpu.pipeline_mode<synchronous>, transform_indices = @transform_3, window_bounds = array<i64: 8, 128>}, {pipeline_mode = #tpu.pipeline_mode<synchronous>, transform_indices = @transform_4, window_bounds = array<i64: 8, 128>}, {pipeline_mode = #tpu.pipeline_mode<synchronous>, transform_indices = @transform_5, window_bounds = array<i64: 8, 1>}, {transform_indices = @transform_6, window_bounds = array<i64: 1, 1>}]} {
    %c0_i32 = arith.constant 0 : i32
    %0 = arith.cmpi eq, %arg0, %c0_i32 : i32
    %1 = arith.extui %0 : i1 to i32
    %c0_i32_0 = arith.constant 0 : i32
    %2 = arith.cmpi ne, %1, %c0_i32_0 : i32
    scf.if %2 {
      %cst_9 = arith.constant 0.000000e+00 : f32
      %12 = vector.broadcast %cst_9 : f32 to vector<8x128xf32>
      %c0_10 = arith.constant 0 : index
      %c0_11 = arith.constant 0 : index
      %13 = vector.load %arg8[%c0_10, %c0_11] : memref<8x128xf32, #tpu.memory_space<vmem>>, vector<8x128xf32>
      tpu.vector_store %arg8[%c0_10, %c0_11], %12 {strides = array<i32>} : memref<8x128xf32, #tpu.memory_space<vmem>>, vector<8x128xf32>,
    } else {
    }
    %c0 = arith.constant 0 : index
    %c0_1 = arith.constant 0 : index
    %3 = vector.load %arg8[%c0, %c0_1] : memref<8x128xf32, #tpu.memory_space<vmem>>, vector<8x128xf32>
    %c0_2 = arith.constant 0 : index
    %c0_3 = arith.constant 0 : index
    %4 = vector.load %arg1[%c0_2, %c0_3] : memref<8x256xf32, #tpu.memory_space<vmem>>, vector<8x256xf32>
    %c0_4 = arith.constant 0 : index
    %c0_5 = arith.constant 0 : index
    %5 = vector.load %arg2[%c0_4, %c0_5] : memref<256x128xf32, #tpu.memory_space<vmem>>, vector<256x128xf32>
    %cst = arith.constant dense<0.000000e+00> : vector<8x128xf32>
    %6 = tpu.matmul %4, %5, %cst {dimension_numbers = #tpu.dot_dimension_numbers<[1], [0], [0], [1], [0, 0, 1, 1], [], []>} : vector<8x256xf32>, vector<256x128xf32>, vector<8x128xf32> -> vector<8x128xf32>
    %7 = arith.addf %3, %6 : vector<8x128xf32>
    %c0_6 = arith.constant 0 : index
    %c0_7 = arith.constant 0 : index
    %8 = vector.load %arg8[%c0_6, %c0_7] : memref<8x128xf32, #tpu.memory_space<vmem>>, vector<8x128xf32>
    tpu.vector_store %arg8[%c0_6, %c0_7], %7 {strides = array<i32>} : memref<8x128xf32, #tpu.memory_space<vmem>>, vector<8x128xf32>,
    %c3_i32 = arith.constant 3 : i32
    %9 = arith.cmpi eq, %arg0, %c3_i32 : i32
    %10 = arith.extui %9 : i1 to i32
    %c0_i32_8 = arith.constant 0 : i32
    %11 = arith.cmpi ne, %10, %c0_i32_8 : i32
    scf.if %11 {
      %c0_9 = arith.constant 0 : index
      %c0_10 = arith.constant 0 : index
      %12 = vector.load %arg8[%c0_9, %c0_10] : memref<8x128xf32, #tpu.memory_space<vmem>>, vector<8x128xf32>
      %c0_11 = arith.constant 0 : index
      %c0_12 = arith.constant 0 : index
      %13 = vector.load %arg3[%c0_11, %c0_12] : memref<1x128xf32, #tpu.memory_space<vmem>>, vector<1x128xf32>
      %14 = vector.broadcast %13 : vector<1x128xf32> to vector<8x128xf32>
      %15 = arith.addf %12, %14 : vector<8x128xf32>
      %16 = tpu.iota {dimensions = array<i32: 1>} : vector<8x128xi32>
      %c16_i32 = arith.constant 16 : i32
      %17 = vector.broadcast %c16_i32 : i32 to vector<8x128xi32>
      %18 = arith.cmpi slt, %16, %17 : vector<8x128xi32>
      %cst_13 = arith.constant -1.000000e+30 : f32
      %19 = vector.broadcast %cst_13 : f32 to vector<8x128xf32>
      %20 = arith.select %18, %15, %19 : vector<8x128xi1>, vector<8x128xf32>
      %cst_14 = arith.constant dense<0xFF800000> : vector<8xf32>
      %21 = vector.multi_reduction <maximumf>, %20, %cst_14 [1] : vector<8x128xf32> to vector<8xf32>
      %22 = vector.shape_cast %21 : vector<8xf32> to vector<8x1xf32>
      %23 = vector.broadcast %22 : vector<8x1xf32> to vector<8x128xf32>
      %24 = arith.cmpf oeq, %20, %23 : vector<8x128xf32>
      %c128_i32 = arith.constant 128 : i32
      %25 = vector.broadcast %c128_i32 : i32 to vector<8x128xi32>
      %26 = arith.select %24, %16, %25 : vector<8x128xi1>, vector<8x128xi32>
      %cst_15 = arith.constant dense<2147483647> : vector<8xi32>
      %27 = vector.multi_reduction <minsi>, %26, %cst_15 [1] : vector<8x128xi32> to vector<8xi32>
      %28 = vector.shape_cast %27 : vector<8xi32> to vector<8x1xi32>
      %29 = tpu.iota {dimensions = array<i32: 0>} : vector<8x1xi32>
      %c2_i32 = arith.constant 2 : i32
      %30 = vector.broadcast %c2_i32 : i32 to vector<8x1xi32>
      %31 = arith.cmpi slt, %29, %30 : vector<8x1xi32>
      %32 = arith.extui %31 : vector<8x1xi1> to vector<8x1xi32>
      %33 = arith.sitofp %32 : vector<8x1xi32> to vector<8x1xf32>
      %c0_16 = arith.constant 0 : index
      %c0_17 = arith.constant 0 : index
      %34 = vector.load %arg4[%c0_16, %c0_17] : memref<8x128xf32, #tpu.memory_space<vmem>>, vector<8x128xf32>
      %c0_18 = arith.constant 0 : index
      %c0_19 = arith.constant 0 : index
      %35 = vector.load %arg6[%c0_18, %c0_19] : memref<8x1xi32, #tpu.memory_space<vmem>>, vector<8x1xi32>
      %cst_20 = arith.constant -1.000000e+30 : f32
      %36 = vector.broadcast %cst_20 : f32 to vector<8x128xf32>
      %37 = arith.select %18, %34, %36 : vector<8x128xi1>, vector<8x128xf32>
      %cst_21 = arith.constant dense<0xFF800000> : vector<8xf32>
      %38 = vector.multi_reduction <maximumf>, %37, %cst_21 [1] : vector<8x128xf32> to vector<8xf32>
      %39 = vector.shape_cast %38 : vector<8xf32> to vector<8x1xf32>
      %40 = vector.broadcast %39 : vector<8x1xf32> to vector<8x128xf32>
      %41 = arith.subf %37, %40 : vector<8x128xf32>
      %42 = math.exp %41 : vector<8x128xf32>
      %cst_22 = arith.constant dense<0.000000e+00> : vector<8xf32>
      %43 = vector.multi_reduction <add>, %42, %cst_22 [1] : vector<8x128xf32> to vector<8xf32>
      %44 = vector.shape_cast %43 : vector<8xf32> to vector<8x1xf32>
      %45 = math.log %44 : vector<8x1xf32>
      %46 = arith.addf %39, %45 : vector<8x1xf32>
      %47 = vector.broadcast %35 : vector<8x1xi32> to vector<8x128xi32>
      %48 = arith.cmpi eq, %16, %47 : vector<8x128xi32>
      %cst_23 = arith.constant 0.000000e+00 : f32
      %49 = vector.broadcast %cst_23 : f32 to vector<8x128xf32>
      %50 = arith.select %48, %37, %49 : vector<8x128xi1>, vector<8x128xf32>
      %cst_24 = arith.constant dense<0.000000e+00> : vector<8xf32>
      %51 = vector.multi_reduction <add>, %50, %cst_24 [1] : vector<8x128xf32> to vector<8xf32>
      %52 = vector.shape_cast %51 : vector<8xf32> to vector<8x1xf32>
      %53 = arith.subf %46, %52 : vector<8x1xf32>
      %c0_25 = arith.constant 0 : index
      %c0_26 = arith.constant 0 : index
      %54 = vector.load %arg5[%c0_25, %c0_26] : memref<8x128xf32, #tpu.memory_space<vmem>>, vector<8x128xf32>
      %cst_27 = arith.constant -1.000000e+30 : f32
      %55 = vector.broadcast %cst_27 : f32 to vector<8x128xf32>
      %56 = arith.select %18, %54, %55 : vector<8x128xi1>, vector<8x128xf32>
      %cst_28 = arith.constant dense<0xFF800000> : vector<8xf32>
      %57 = vector.multi_reduction <maximumf>, %56, %cst_28 [1] : vector<8x128xf32> to vector<8xf32>
      %58 = vector.shape_cast %57 : vector<8xf32> to vector<8x1xf32>
      %59 = vector.broadcast %58 : vector<8x1xf32> to vector<8x128xf32>
      %60 = arith.subf %56, %59 : vector<8x128xf32>
      %61 = math.exp %60 : vector<8x128xf32>
      %cst_29 = arith.constant dense<0.000000e+00> : vector<8xf32>
      %62 = vector.multi_reduction <add>, %61, %cst_29 [1] : vector<8x128xf32> to vector<8xf32>
      %63 = vector.shape_cast %62 : vector<8xf32> to vector<8x1xf32>
      %64 = math.log %63 : vector<8x1xf32>
      %65 = arith.addf %58, %64 : vector<8x1xf32>
      %66 = vector.broadcast %28 : vector<8x1xi32> to vector<8x128xi32>
      %67 = arith.cmpi eq, %16, %66 : vector<8x128xi32>
      %cst_30 = arith.constant 0.000000e+00 : f32
      %68 = vector.broadcast %cst_30 : f32 to vector<8x128xf32>
      %69 = arith.select %67, %56, %68 : vector<8x128xi1>, vector<8x128xf32>
      %cst_31 = arith.constant dense<0.000000e+00> : vector<8xf32>
      %70 = vector.multi_reduction <add>, %69, %cst_31 [1] : vector<8x128xf32> to vector<8xf32>
      %71 = vector.shape_cast %70 : vector<8xf32> to vector<8x1xf32>
      %72 = arith.subf %65, %71 : vector<8x1xf32>
      %73 = arith.mulf %53, %33 : vector<8x1xf32>
      %74 = vector.shape_cast %73 : vector<8x1xf32> to vector<1x8x1xf32>
      %cst_32 = arith.constant dense<0.000000e+00> : vector<1xf32>
      %75 = vector.multi_reduction <add>, %74, %cst_32 [1, 2] : vector<1x8x1xf32> to vector<1xf32>
      %76 = vector.shape_cast %75 : vector<1xf32> to vector<1x1x1xf32>
      %77 = vector.extract %76[0, 0, 0] : f32 from vector<1x1x1xf32>
      %cst_33 = arith.constant 5.000000e-01 : f32
      %78 = arith.mulf %77, %cst_33 : f32
      %79 = arith.mulf %72, %33 : vector<8x1xf32>
      %80 = vector.shape_cast %79 : vector<8x1xf32> to vector<1x8x1xf32>
      %cst_34 = arith.constant dense<0.000000e+00> : vector<1xf32>
      %81 = vector.multi_reduction <add>, %80, %cst_34 [1, 2] : vector<1x8x1xf32> to vector<1xf32>
      %82 = vector.shape_cast %81 : vector<1xf32> to vector<1x1x1xf32>
      %83 = vector.extract %82[0, 0, 0] : f32 from vector<1x1x1xf32>
      %cst_35 = arith.constant 5.000000e-01 : f32
      %84 = arith.mulf %83, %cst_35 : f32
      %cst_36 = arith.constant 5.000000e-01 : f32
      %85 = arith.mulf %cst_36, %78 : f32
      %cst_37 = arith.constant 5.000000e-01 : f32
      %86 = arith.mulf %cst_37, %84 : f32
      %87 = arith.addf %85, %86 : f32
      %c0_38 = arith.constant 0 : index
      %c0_39 = arith.constant 0 : index
      %88 = memref.load %arg7[%c0_38, %c0_39] : memref<1x1xf32, #tpu.memory_space<smem>>
      memref.store %87, %arg7[%c0_38, %c0_39] : memref<1x1xf32, #tpu.memory_space<smem>>
    } else {
    }
    return
  }
  func.func @transform_0(%arg0: i32) -> (i32, i32) {
    %c0_i32 = arith.constant 0 : i32
    %c0_i32_0 = arith.constant 0 : i32
    return %c0_i32, %arg0 : i32, i32
  }
  func.func @transform_1(%arg0: i32) -> (i32, i32) {
    %c0_i32 = arith.constant 0 : i32
    %c0_i32_0 = arith.constant 0 : i32
    return %arg0, %c0_i32 : i32, i32
  }
  func.func @transform_2(%arg0: i32) -> (i32, i32) {
    %c0_i32 = arith.constant 0 : i32
    %c0_i32_0 = arith.constant 0 : i32
    %c0_i32_1 = arith.constant 0 : i32
    return %c0_i32, %c0_i32_0 : i32, i32
  }
  func.func @transform_3(%arg0: i32) -> (i32, i32) {
    %c0_i32 = arith.constant 0 : i32
    %c0_i32_0 = arith.constant 0 : i32
    %c0_i32_1 = arith.constant 0 : i32
    return %c0_i32, %c0_i32_0 : i32, i32
  }
  func.func @transform_4(%arg0: i32) -> (i32, i32) {
    %c0_i32 = arith.constant 0 : i32
    %c0_i32_0 = arith.constant 0 : i32
    %c0_i32_1 = arith.constant 0 : i32
    return %c0_i32, %c0_i32_0 : i32, i32
  }
  func.func @transform_5(%arg0: i32) -> (i32, i32) {
    %c0_i32 = arith.constant 0 : i32
    %c0_i32_0 = arith.constant 0 : i32
    %c0_i32_1 = arith.constant 0 : i32
    return %c0_i32, %c0_i32_0 : i32, i32
  }
  func.func @transform_6(%arg0: i32) -> (i32, i32) {
    %c0_i32 = arith.constant 0 : i32
    %c0_i32_0 = arith.constant 0 : i32
    %c0_i32_1 = arith.constant 0 : i32
    return %c0_i32, %c0_i32_0 : i32, i32
  }
}

</mosaic_0001>

<bundles_post_ra>
// kernel: tpu_custom_call.1
= control target key start
LH: loop header
LB: loop body
LE: loop exit
PB: predicated region body
PF: predicated region fallthrough
CT: control target
= control target key end

     0   :  { %11 = vsyncpa [#allocation4], 0  ;;  %s1240_s0 = inlined_call_operand.hbm [shape: f32[8,1024], index: 0, kind: input, shape index: {}]   ;;  %s1241_s1 = inlined_call_operand.hbm [shape: f32[1024,128], index: 1, kind: input, shape index: {}]   ;;  %s1242_s2 = inlined_call_operand.hbm [shape: f32[1,128], index: 2, kind: input, shape index: {}]   ;;  %s1243_s3 = inlined_call_operand.vmem [shape: f32[8,128], index: 3, kind: input, shape index: {}]   ;;  %s1244_s4 = inlined_call_operand.vmem [shape: f32[8,128], index: 4, kind: input, shape index: {}]   ;;  %s1245_s5 = inlined_call_operand.vmem [shape: s32[8,1], index: 5, kind: input, shape index: {}]   ;;  %s1246_s6 = inlined_call_operand.hbm [shape: f32[1,1], index: 6, kind: output, shape index: {}]  }
   0x1   :  { %13 = vsyncpa [#allocation4 + $0x1], 0 }
   0x2   :  { %14 = vsyncpa [#allocation7], 0 }
   0x3   :  { %16 = vsyncpa [#allocation7 + $0x1], 0 }
   0x4   :  { %17 = vsyncpa [#allocation5], 0  ;;  %s982_s21 = smov 0   ;;  %s984_s22 = smov 0  }
   0x5   :  { %s986_s23 = smov 0   ;;  %s988_s24 = smov 0  }
   0x6 LB: > { %s1001_s25 = sadd.s32 4294967295, %s936_s24   ;;  %s1004_s26 = sadd.s32 1, %s936_s24   ;;  %s936_s24 = sphi %s988_s24, %s1265_s24   ;;  %s932_s23 = sphi %s986_s23, %s1264_s23   ;;  %s928_s22 = sphi %s984_s22, %s1263_s22   ;;  %s924_s21 = sphi %s982_s21, %s1262_s21  }
   0x7   : > { %s27_s27 = ssub.s32 %s936_s24, %s1004_s26  ;;  %s30_s28 = sadd.s32 1, %s932_s23 }
   0x8   : > { %p28_p0 = scmp.eq.s32.totalorder %s27_s27, 0  ;;  %p37_p1 = scmp.ne.s32.totalorder %s932_s23, %s928_s22 }
   0x9   : > { %p43_p2 = scmp.ne.s32.totalorder %s928_s22, %s924_s21  ;;  %p1247_p3 = scmp.eq.s32.totalorder %s1001_s25, 0 }
   0xa   : > { %s1014_s29 = scalar_select %p28_p0, %s932_s23, %s30_s28  }
   0xb   : > { %p1018_p4 = por %p1247_p3, %p43_p2  ;;  %p619_p5 = scmp.ge.s32.totalorder %s936_s24, 1 }
   0xc   : > { %p185_p6 = scmp.lt.s32.totalorder %s936_s24, 5  ;;  %s938_s8 = smov [#allocation8]  }
   0xd   : > { %s1250_s30 = scalar_select %p1018_p4, 1, 0 }
   0xe   : > { %p1025_p8 = pnand %p619_p5, %p185_p6  ;;  %s198_s9 = sshll.u32 %s938_s8, 4  ;;  %s199_s9 = int_to_ptr.vmem [resolvable:$true] %s198_s9 }
   0xf   : > { %p38_p9 = scmp.eq.s32.totalorder %s936_s24, 0  ;;  %s1041_s11 = sand.u32 1, %s932_s23  }
  0x10   : > { %s1251_s7 = scalar_select %p1025_p8, 1, 0 }
  0x11   : > { %p725_p10 = pneg %p1025_p8  ;;  %p1036_p12 = por %p38_p9, %p37_p1 }
  0x12   : > { %s622_s13 = sshll.u32 %s1041_s11, 4  ;;  %s640_s14 = sshll.u32 %s936_s24, 8 }
  0x13   : > { %s1252_s10 = scalar_select %p1036_p12, 1, 0 }
  0x14   : > { %p1045_p13 = pnand %p725_p10, %p1247_p3  ;;  %s790_s17 = scalar_lea.hbm %s1242_s2, 16 }
  0x15   : > { %p791_p0 = scmp.ne.s32.totalorder %s1242_s2, %s790_s17  ;;  %p797_p6 = scmp.lt.u32.totalorder %s790_s17, %s1242_s2 }
  0x16   : > { %p792_p1 = pneg %p1045_p13 }
  0x18   : > { %p793_p2 = pnand %p792_p1, %p791_p0 }
  0x1a   : > { %p794_p5 = pneg %p793_p2 }
  0x1c   : > { %p799_p9 = pnand %p797_p6, %p794_p5 }
  0x1e   : > { %802 = shalt.err (!%p799_p9)
}
  0x1f   : > { %s803_s27 = scalar_lea.vmem %s199_s9, 16  ;;  %s810_s28 = scalar_lea.vmem %s199_s9, 32 }
  0x20   : > { %p804_p10 = scmp.ne.s32.totalorder %s199_s9, %s803_s27  ;;  %p811_p11 = scmp.lt.s32.totalorder %s199_s9, %s199_s9 }
  0x21   : > { %p812_p4 = scmp.lt.s32.totalorder %s810_s28, %s803_s27 }
  0x22   : > { %p806_p7 = pnand %p804_p10, %p792_p1 }
  0x23   : > { %p813_p8 = por %p812_p4, %p811_p11 }
  0x24   : > { %p807_p3 = pneg %p806_p7 }
  0x26   : > { %p814_p12 = pnand %p813_p8, %p807_p3 }
  0x28   : > { %817 = shalt.err (!%p814_p12)
}
  0x29   : > { %728 = dma.hbm_to_vmem [thread:$0]  (!%p1045_p13), %s1242_s2, 16, %s199_s9, [#allocation7]  }
  0x2a   : > { %s1070_s18 = scalar_lea.hbm %s1240_s0, %s640_s14  ;;  %s222_s19 = scalar_lea.vmem [#allocation3], %s622_s13 }
  0x2b   : > { %s230_s12 = sshll.u32 %s222_s19, 4  ;;  %p1254_p3 = scmp.ne.s32.totalorder %s1252_s10, 0  ;;  %s1072_s12 = int_to_ptr.vmem [resolvable:$true] %s230_s12 }
  0x2c   : > { %p1255_p4 = scmp.lt.s32.totalorder %s936_s24, 4  ;;  %s625_s9 = sshll.u32 %s1041_s11, 8 }
  0x2d   : > { %s237_s21 = sand.u32 1, %s936_s24   ;;  %s219_s14 = scalar_lea.sflag [#allocation4], %s1041_s11 }
  0x2e   : > { %p1078_p7 = pnand %p1255_p4, %p1254_p3  ;;  %s818_s27 = scalar_lea.hbm %s1070_s18, 256 }
  0x2f   : > { %p819_p8 = scmp.ne.s32.totalorder %s1070_s18, %s818_s27  ;;  %s823_s28 = scalar_lea.hbm %s1240_s0, 1024 }
  0x30   : > { %p820_p11 = pneg %p1078_p7  ;;  %p824_p0 = scmp.lt.u32.totalorder %s1070_s18, %s1240_s0 }
  0x31   : > { %p825_p1 = scmp.lt.u32.totalorder %s823_s28, %s818_s27  ;;  %p827_p5 = scmp.lt.u32.totalorder %s818_s27, %s1070_s18 }
  0x32   : > { %p821_p12 = pnand %p820_p11, %p819_p8 }
  0x33   : > { %p826_p2 = por %p825_p1, %p824_p0 }
  0x34   : > { %p822_p13 = pneg %p821_p12 }
  0x35   : > { %p828_p6 = por %p827_p5, %p826_p2 }
  0x37   : > { %p829_p9 = pnand %p828_p6, %p822_p13 }
  0x39   : > { %832 = shalt.err (!%p829_p9)
}
  0x3a   : > { %s833_s16 = scalar_lea.vmem %s1072_s12, 256  ;;  %s939_s17 = smov [#allocation3]  }
  0x3b   : > { %p834_p10 = scmp.ne.s32.totalorder %s1072_s12, %s833_s16  ;;  %s838_s19 = sshll.u32 %s939_s17, 4  ;;  %s839_s19 = int_to_ptr.vmem [resolvable:$false] %s838_s19 }
  0x3c   : > { %s840_s13 = scalar_lea.vmem %s839_s19, 512  ;;  %p841_p8 = scmp.lt.s32.totalorder %s1072_s12, %s839_s19 }
  0x3d   : > { %p836_p3 = pnand %p834_p10, %p820_p11  ;;  %p842_p12 = scmp.lt.s32.totalorder %s840_s13, %s833_s16 }
  0x3f   : > { %p837_p4 = pneg %p836_p3  ;;  %p843_p0 = por %p842_p12, %p841_p8 }
  0x41   : > { %p844_p1 = pnand %p843_p0, %p837_p4 }
  0x43   : > { %847 = shalt.err (!%p844_p1)
}
  0x44   : > { %732 = dma.hbm_to_vmem [thread:$0]  (!%p1078_p7), %s1070_s18, 256, %s1072_s12, %s219_s14  }
  0x45   : > { %s241_s27 = scalar_lea.vmem [#allocation6], %s625_s9  ;;  %s641_s28 = sshll.u32 %s936_s24, 12 }
  0x46   : > { %s248_s10 = sshll.u32 %s241_s27, 4  ;;  %s1118_s16 = scalar_lea.hbm %s1241_s1, %s641_s28  ;;  %s1112_s10 = int_to_ptr.vmem [resolvable:$true] %s248_s10 }
  0x47   : > { %s1122_s17 = scalar_lea.sflag [#allocation7], %s237_s21  ;;  %s848_s19 = scalar_lea.hbm %s1118_s16, 4096 }
  0x48   : > { %p849_p13 = scmp.ne.s32.totalorder %s1118_s16, %s848_s19  ;;  %s853_s12 = scalar_lea.hbm %s1241_s1, 16384 }
  0x49   : > { %p854_p6 = scmp.lt.u32.totalorder %s1118_s16, %s1241_s1  ;;  %p855_p9 = scmp.lt.u32.totalorder %s853_s12, %s848_s19 }
  0x4a   : > { %p851_p2 = pnand %p849_p13, %p820_p11  ;;  %p857_p3 = scmp.lt.u32.totalorder %s848_s19, %s1118_s16 }
  0x4b   : > { %p856_p10 = por %p855_p9, %p854_p6 }
  0x4c   : > { %p852_p5 = pneg %p851_p2 }
  0x4d   : > { %p858_p4 = por %p857_p3, %p856_p10 }
  0x4f   : > { %p859_p8 = pnand %p858_p4, %p852_p5 }
  0x51   : > { %862 = shalt.err (!%p859_p8)
}
  0x52   : > { %s863_s24 = scalar_lea.vmem %s1112_s10, 4096  ;;  %s940_s21 = smov [#allocation6]  }
  0x53   : > { %p864_p12 = scmp.ne.s32.totalorder %s1112_s10, %s863_s24  ;;  %s868_s13 = sshll.u32 %s940_s21, 4  ;;  %s869_s13 = int_to_ptr.vmem [resolvable:$false] %s868_s13 }
  0x54   : > { %s870_s27 = scalar_lea.vmem %s869_s13, 8192  ;;  %p871_p13 = scmp.lt.s32.totalorder %s1112_s10, %s869_s13 }
  0x55   : > { %p866_p0 = pnand %p864_p12, %p820_p11  ;;  %p872_p2 = scmp.lt.s32.totalorder %s870_s27, %s863_s24 }
  0x57   : > { %p867_p1 = pneg %p866_p0  ;;  %p873_p6 = por %p872_p2, %p871_p13 }
  0x59   : > { %p874_p9 = pnand %p873_p6, %p867_p1 }
  0x5b   : > { %877 = shalt.err (!%p874_p9)
}
  0x5c   : > { %s941_s28 = smov 128   ;;  %s942_s8 = smov 8  }
  0x5d   : > { %735 = dma.hbm_to_vmem [thread:$0]  (!%p1078_p7), %s1118_s16, 4096, %s1112_s10, %s1122_s17, %s941_s28, %s941_s28, %s942_s8  }
  0x5e   : > { %p1257_p11 = scmp.ne.s32.totalorder %s1251_s7, 0 }
  0x5f   : > { %s262_s15 = sand.u32 (!%p1257_p11), 1, %s928_s22   ;;  %p1258_p5 = scmp.ne.s32.totalorder (!%p1257_p11), %s1250_s30, 0 }
  0x60   : > { %260 = sbr.rel (%p1257_p11) target bundleno = 1195 (0x4ab), region = 44  ;;  %s629_s19 = sshll.u32 (!%p1257_p11), %s262_s15, 4 }
  0x61   : > { %s263_s11 = scalar_lea.sflag (!%p1257_p11), [#allocation4], %s262_s15  ;;  %s1151_s18 = scalar_lea.vmem (!%p1257_p11), [#allocation3], %s629_s19 }
  0x67   : > { %907 = dma.done.wait (%p1258_p5), %s263_s11, 256  }
  0x68   : > { %909 = vsyncadd (%p1258_p5), %s263_s11, 4294967040  ;;  %s271_s12 = sand.u32 1, %s1001_s25   ;;  %s630_s20 = sshll.u32 %s262_s15, 8 }
  0x69   : > { %s272_s10 = scalar_lea.sflag [#allocation7], %s271_s12  ;;  %s1158_s16 = scalar_lea.vmem [#allocation6], %s630_s20 }
  0x6a   : > { %911 = dma.done.wait (%p1258_p5), %s272_s10, 4096  }
  0x6b   : > { %913 = vsyncadd (%p1258_p5), %s272_s10, 4294963200  ;;  %p1259_p7 = scmp.eq.s32.totalorder %s1001_s25, 0 }
  0x6d   : > { %915 = dma.done.wait (%p1259_p7), [#allocation7], 16   ;;  %p1260_p10 = pmov %p1259_p7 }
  0x6e   : > { %p1261_p3 = scmp.ne.s32.totalorder %s1001_s25, 0 }
  0x6f   : > { %917 = vsyncadd (%p1260_p10), [#allocation7], 4294967280  ;;  %v943_v0 = vmov (!%p1261_p3), 0.0  }
  0x70   : > { %313 = sbr.rel (%p1261_p3) target bundleno = 119 (0x77), region = 60  ;;  %314 = vst [vmem:[#allocation2] sm:$0xff] (!%p1261_p3), %v943_v0 }
  0x77 PF: > { %v334_v1 = vld [vmem:[%s1158_s16 + $0x80] sm:$0xff]  ;;  %v335_v2 = vld [vmem:[%s1158_s16 + $0x88] sm:$0xff]  ;;  %v336_v6 = vld [vmem:[%s1158_s16 + $0x90] sm:$0xff]  ;;  %p633_p4 = scmp.ne.s32.totalorder %s1001_s25, 3 }
  0x78   : > { %v318_v3 = vld [vmem:[%s1158_s16] sm:$0xff]  ;;  %v677_v4 = vpack.c.bf16 %v335_v2, %v334_v1  ;;  %v319_v5 = vld [vmem:[%s1158_s16 + $0x8] sm:$0xff]  ;;  %v337_v7 = vld [vmem:[%s1158_s16 + $0x98] sm:$0xff]  ;;  %v435_v58 = vlaneseq (!%p633_p4)  ;;  %v944_v2 = vmov (!%p633_p4), 0   ;;  %vm501_vm6 = vcmask (!%p633_p4), 7168  }
  0x79   : > { %v679_v8 = vpack.c.bf16 %v319_v5, %v318_v3  ;;  %v681_v9 = vpack.c.bf16 %v337_v7, %v336_v6  ;;  %v320_v10 = vld [vmem:[%s1158_s16 + $0x10] sm:$0xff]  ;;  %v321_v11 = vld [vmem:[%s1158_s16 + $0x18] sm:$0xff]  ;;  %v338_v12 = vld [vmem:[%s1158_s16 + $0xa0] sm:$0xff]  ;;  %780 = vset.pattern.permute.xlu1 (!%p633_p4), %v944_v2  ;;  %781 = vset.pattern.permute.xlu0 (!%p633_p4), %v944_v2 }
  0x7a   : > { %678 = vmatprep.subr.bf16.mxu0 %v677_v4  ;;  %v339_v13 = vld [vmem:[%s1158_s16 + $0xa8] sm:$0xff]  ;;  %v683_v14 = vpack.c.bf16 %v321_v11, %v320_v10  ;;  %v322_v16 = vld [vmem:[%s1158_s16 + $0x20] sm:$0xff]  ;;  %v340_v18 = vld [vmem:[%s1158_s16 + $0xb0] sm:$0xff]  ;;  %v436_v60 = vand.u32 (!%p633_p4), 127, %v435_v58 }
  0x7b   : > { %680 = vmatpush3.bf16.msra.mxu0 %v679_v8  ;;  %v685_v15 = vpack.c.bf16 %v339_v13, %v338_v12  ;;  %v323_v17 = vld [vmem:[%s1158_s16 + $0x28] sm:$0xff]  ;;  %v341_v19 = vld [vmem:[%s1158_s16 + $0xb8] sm:$0xff]  ;;  %v324_v22 = vld [vmem:[%s1158_s16 + $0x30] sm:$0xff] }
  0x7c   : > { %682 = vmatprep.subr.bf16.mxu0 %v681_v9  ;;  %v687_v20 = vpack.c.bf16 %v323_v17, %v322_v16  ;;  %v689_v21 = vpack.c.bf16 %v341_v19, %v340_v18  ;;  %v325_v23 = vld [vmem:[%s1158_s16 + $0x38] sm:$0xff]  ;;  %v342_v24 = vld [vmem:[%s1158_s16 + $0xc0] sm:$0xff]  ;;  %v343_v25 = vld [vmem:[%s1158_s16 + $0xc8] sm:$0xff]  ;;  %vm437_vm0 = vcmp.lt.s32.totalorder (!%p633_p4), %v436_v60, 16 }
  0x7d   : > { %v317_v26 = vld [vmem:[%s1151_s18 + $0x8] sm:$0xff]  ;;  %v691_v27 = vpack.c.bf16 %v325_v23, %v324_v22  ;;  %v693_v28 = vpack.c.bf16 %v343_v25, %v342_v24  ;;  %v326_v29 = vld [vmem:[%s1158_s16 + $0x40] sm:$0xff]  ;;  %v344_v31 = vld [vmem:[%s1158_s16 + $0xd0] sm:$0xff] }
  0x7e   : > { %414 = vmatprep.mubr.f32.mxu0 %v317_v26  ;;  %v327_v30 = vld [vmem:[%s1158_s16 + $0x48] sm:$0xff]  ;;  %v345_v32 = vld [vmem:[%s1158_s16 + $0xd8] sm:$0xff]  ;;  %v328_v35 = vld [vmem:[%s1158_s16 + $0x50] sm:$0xff] }
  0x7f   : > { %684 = vmatpush3.bf16.msra.mxu0 %v683_v14  ;;  %v695_v33 = vpack.c.bf16 %v327_v30, %v326_v29  ;;  %v697_v34 = vpack.c.bf16 %v345_v32, %v344_v31  ;;  %v329_v36 = vld [vmem:[%s1158_s16 + $0x58] sm:$0xff]  ;;  %v346_v37 = vld [vmem:[%s1158_s16 + $0xe0] sm:$0xff]  ;;  %v347_v38 = vld [vmem:[%s1158_s16 + $0xe8] sm:$0xff]  ;;  %v458_v29 = vshrl.u32 (!%p633_p4), %v435_v58, 7 }
  0x80   : > { %686 = vmatprep.subr.bf16.mxu0 %v685_v15  ;;  %v699_v39 = vpack.c.bf16 %v329_v36, %v328_v35  ;;  %v701_v40 = vpack.c.bf16 %v347_v38, %v346_v37  ;;  %v330_v41 = vld [vmem:[%s1158_s16 + $0x60] sm:$0xff]  ;;  %v331_v42 = vld [vmem:[%s1158_s16 + $0x68] sm:$0xff]  ;;  %v348_v43 = vld [vmem:[%s1158_s16 + $0xf0] sm:$0xff]  ;;  %v945_v35 = vmov (!%p633_p4), 0.0  }
  0x81   : > { %v349_v44 = vld [vmem:[%s1158_s16 + $0xf8] sm:$0xff]  ;;  %v703_v45 = vpack.c.bf16 %v331_v42, %v330_v41  ;;  %v332_v47 = vld [vmem:[%s1158_s16 + $0x70] sm:$0xff]  ;;  %v634_v57 = vld [vmem:[#allocation8] ss:$0 sm:$0xff] (!%p633_p4)  ;;  %vm459_vm5 = vcmp.lt.s32.totalorder (!%p633_p4), %v458_v29, 2 }
  0x82   : > { %v705_v46 = vpack.c.bf16 %v349_v44, %v348_v43  ;;  %v333_v48 = vld [vmem:[%s1158_s16 + $0x78] sm:$0xff]  ;;  %v316_v50 = vld [vmem:[%s1151_s18] sm:$0xff]  ;;  %v635_v36 = vsel (!%p633_p4), %vm459_vm5, 1.0, %v945_v35 }
  0x83   : > { %688 = vmatpush3.bf16.msra.mxu0 %v687_v20  ;;  %v707_v49 = vpack.c.bf16 %v333_v48, %v332_v47  ;;  %v315_v52 = vld [vmem:[#allocation2] sm:$0xff] }
  0x84   : > { %690 = vmatprep.subr.bf16.mxu0 %v689_v21  ;;  %v462_v61 = vld [vmem:[%s1243_s3] sm:$0xff] (!%p633_p4) }
  0x85   : > { %v464_v63 = vsel (!%p633_p4), %vm437_vm0, %v462_v61, -1e+30  ;;  %v483_v0 = vld [vmem:[%s1244_s4] sm:$0xff] (!%p633_p4) }
  0x86   : > { %465 = vmax.xlane.f32.xlu1 (!%p633_p4), %v464_v63  ;;  %v484_v1 = vsel (!%p633_p4), %vm437_vm0, %v483_v0, -1e+30  ;;  %v463_v3 = vld [vmem:[%s1245_s5] sm:$0xff] (!%p633_p4) }
  0x87   : > { %692 = vmatpush3.bf16.msra.mxu0 %v691_v27 }
  0x88   : > { %694 = vmatprep.subr.bf16.mxu0 %v693_v28 }
  0x8a   : > { %485 = vmax.xlane.f32.xlu1 (!%p633_p4), %v484_v1 }
  0x8b   : > { %696 = vmatpush3.bf16.msra.mxu0 %v695_v33 }
  0x8c   : > { %698 = vmatprep.subr.bf16.mxu0 %v697_v34 }
  0x8f   : > { %700 = vmatpush3.bf16.msra.mxu0 %v699_v39 }
  0x90   : > { %702 = vmatprep.subr.bf16.mxu0 %v701_v40 }
  0x93   : > { %704 = vmatpush3.bf16.msra.mxu0 %v703_v45 }
  0x94   : > { %706 = vmatprep.subr.bf16.mxu0 %v705_v46 }
  0x97   : > { %708 = vmatpush3.bf16.msra.mxu0 %v707_v49 }
  0x9a   : > { %415 = vmatmul.mubr.f32.vlgmr.msra.gmra.mrb[0].mxu0 %v316_v50 }
  0x9b   : > { %476 = vperm.xlu1 (!%p633_p4), %780, %v463_v3  }
 0x113   : > { %v466_v8 = vpop.xlane.xlu1 (!%p633_p4), %465 }
 0x114   : > { %v467_v9 = vsub.f32 (!%p633_p4), %v464_v63, %v466_v8 }
 0x116   : > { %v468_v11 = vmul.f32 (!%p633_p4), 1.442695, %v467_v9 }
 0x117   : > { %v486_v10 = vpop.xlane.xlu1 (!%p633_p4), %485 }
 0x118   : > { %v487_v12 = vsub.f32 (!%p633_p4), %v484_v1, %v486_v10  ;;  %782 = vpow2.f32 (!%p633_p4), %v468_v11 }
 0x11a   : > { %v488_v13 = vmul.f32 (!%p633_p4), 1.442695, %v487_v12 }
 0x11b   : > { %v477_v19 = vpop.permute.xlu1 (!%p633_p4), %476 }
 0x11c   : > { %784 = vpow2.f32 (!%p633_p4), %v488_v13  ;;  %vm478_vm3 = vcmp.eq.s32.totalorder (!%p633_p4), %v436_v60, %v477_v19 }
 0x11d   : > { %v479_v21 = vsel (!%p633_p4), %vm478_vm3, %v464_v63, 0.0 }
 0x122   : > { %v783_v18 = vpop.eup (!%p633_p4), %782 }
 0x126   : > { %v785_v20 = vpop.eup (!%p633_p4), %784 }
 0x16d   : > { %v674_v51 = vpop.f32.mrb[0].mxu0  ;;  %425 = sbr.rel (%p633_p4) target bundleno = 1180 (0x49c), region = 64 }
 0x16e   : > { %v675_v53 = vpop.f32.mrb[1].mxu0 }
 0x16f   : > { %v676_v54 = vadd.f32 %v675_v53, %v674_v51 }
 0x171   : > { %v420_v55 = vadd.f32 %v676_v54, %v315_v52 }
 0x173   : > { %421 = vst [vmem:[#allocation2] sm:$0xff] %v420_v55 }
 0x17a   : > { %v426_v56 = vld [vmem:[#allocation2] sm:$0xff] }
 0x17b   : > { %v434_v59 = vadd.f32 %v634_v57, %v426_v56 }
 0x17d   : > { %v438_v62 = vsel %vm437_vm0, %v434_v59, -1e+30 }
 0x17e   : > { %439 = vmax.xlane.f32.xlu0 %v438_v62 }
 0x20b   : > { %v440_v4 = vpop.xlane.xlu0 %439 }
 0x20c   : > { %vm441_vm1 = vcmp.eq.f32.partialorder %v438_v62, %v440_v4 }
 0x20d   : > { %v442_v5 = vsel %vm441_vm1, %v436_v60, 128 }
 0x20e   : > { %v444_v6 = vshra.s32 %v442_v5, 16  ;;  %v443_v14 = vand.u32 65535, %v442_v5 }
 0x210   : > { %v446_v7 = vcvt.s32.f32 %v444_v6  ;;  %v445_v16 = vcvt.s32.f32 %v443_v14 }
 0x212   : > { %447 = vmin.xlane.f32.xlu0 %v446_v7 }
 0x29f   : > { %v448_v15 = vpop.xlane.xlu0 %447 }
 0x2a0   : > { %vm449_vm2 = vcmp.eq.f32.partialorder %v446_v7, %v448_v15  ;;  %v454_v22 = vcvt.f32.s32 %v448_v15 }
 0x2a1   : > { %v450_v17 = vsel %vm449_vm2, %v445_v16, inf }
 0x2a2   : > { %451 = vmin.xlane.f32.xlu0 %v450_v17  ;;  %v455_v24 = vshll.u32 %v454_v22, 16 }
 0x2a6   : > { %470 = vadd.xlane.f32.xlu0 %v783_v18 }
 0x2aa   : > { %490 = vadd.xlane.f32.xlu0 %v785_v20 }
 0x2ae   : > { %480 = vadd.xlane.f32.xlu0 %v479_v21 }
 0x32f   : > { %v452_v23 = vpop.xlane.xlu0 %451 }
 0x330   : > { %v453_v25 = vcvt.f32.s32 %v452_v23 }
 0x332   : > { %v456_v26 = vadd.s32 %v455_v24, %v453_v25 }
 0x333   : > { %v471_v27 = vpop.xlane.xlu0 %470 }
 0x334   : > { %786 = vlog2.f32 %v471_v27  ;;  %vm495_vm4 = vcmp.eq.s32.totalorder %v436_v60, %v456_v26 }
 0x335   : > { %v496_v28 = vsel %vm495_vm4, %v484_v1, 0.0 }
 0x336   : > { %497 = vadd.xlane.f32.xlu0 %v496_v28 }
 0x337   : > { %v491_v30 = vpop.xlane.xlu0 %490 }
 0x338   : > { %788 = vlog2.f32 %v491_v30 }
 0x33b   : > { %v481_v33 = vpop.xlane.xlu0 %480 }
 0x33e   : > { %v787_v31 = vpop.eup %786 }
 0x33f   : > { %v473_v32 = vmul.f32 0.6931472, %v787_v31 }
 0x341   : > { %v474_v34 = vadd.f32 %v473_v32, %v466_v8 }
 0x342   : > { %v789_v40 = vpop.eup %788 }
 0x343   : > { %v482_v37 = vsub.f32 %v474_v34, %v481_v33  ;;  %v493_v41 = vmul.f32 0.6931472, %v789_v40 }
 0x345   : > { %v500_v38 = vmul.f32 %v635_v36, %v482_v37  ;;  %v494_v42 = vadd.f32 %v493_v41, %v486_v10 }
 0x347   : > { %v502_v39 = vsel %vm501_vm6, %v500_v38, 0.0 }
 0x348   : > { %503 = vadd.xlane.f32.xlu1 %v502_v39 }
 0x3c3   : > { %v498_v43 = vpop.xlane.xlu0 %497 }
 0x3c4   : > { %v499_v44 = vsub.f32 %v494_v42, %v498_v43 }
 0x3c6   : > { %v513_v45 = vmul.f32 %v635_v36, %v499_v44 }
 0x3c8   : > { %v514_v46 = vsel %vm501_vm6, %v513_v45, 0.0 }
 0x3c9   : > { %515 = vadd.xlane.f32.xlu0 %v514_v46 }
 0x3d5   : > { %v504_v47 = vpop.xlane.xlu1 %503 }
 0x3d6   : > { %v505_v48 = vrot.slane %v504_v47, 4 }
 0x3d8   : > { %v506_v49 = vadd.f32 %v505_v48, %v504_v47 }
 0x3da   : > { %v507_v50 = vrot.slane %v506_v49, 2 }
 0x3dc   : > { %v508_v51 = vadd.f32 %v507_v50, %v506_v49 }
 0x3de   : > { %v509_v52 = vrot.slane %v508_v51, 1 }
 0x3e0   : > { %v510_v53 = vadd.f32 %v509_v52, %v508_v51 }
 0x3e2   : > { %709 = vpush %v510_v53 }
 0x413   : > { %s710_s21 = spop %709 }
 0x414   : > { %s512_s13 = smul.f32 0.5, %s710_s21 }
 0x416   : > { %s525_s8 = smul.f32 0.5, %s512_s13 }
 0x456   : > { %v516_v54 = vpop.xlane.xlu0 %515 }
 0x457   : > { %v517_v55 = vrot.slane %v516_v54, 4 }
 0x459   : > { %v518_v56 = vadd.f32 %v517_v55, %v516_v54 }
 0x45b   : > { %v519_v57 = vrot.slane %v518_v56, 2 }
 0x45d   : > { %v520_v58 = vadd.f32 %v519_v57, %v518_v56 }
 0x45f   : > { %v521_v59 = vrot.slane %v520_v58, 1 }
 0x461   : > { %v522_v60 = vadd.f32 %v521_v59, %v520_v58 }
 0x463   : > { %711 = vpush %v522_v60 }
 0x494   : > { %s712_s27 = spop %711 }
 0x495   : > { %s524_s28 = smul.f32 0.5, %s712_s27 }
 0x497   : > { %s526_s15 = smul.f32 0.5, %s524_s28 }
 0x499   : > { %s527_s19 = sadd.f32 %s526_s15, %s525_s8 }
 0x49b   : > { %529 = sst [smem:[#allocation9]] %s527_s19 }
 0x49c PF: > { %p739_p8 = scmp.eq.s32.totalorder %s1001_s25, 3  ;;  %s878_s12 = scalar_lea.hbm %s1246_s6, 16 }
 0x49d   : > { %p879_p12 = scmp.ne.s32.totalorder %s1246_s6, %s878_s12  ;;  %p884_p13 = scmp.lt.u32.totalorder %s878_s12, %s1246_s6 }
 0x49f   : > { %p880_p0 = pnand %p879_p12, %p739_p8 }
 0x4a1   : > { %p881_p1 = pneg %p880_p0 }
 0x4a3   : > { %p886_p2 = pnand %p884_p13, %p881_p1 }
 0x4a5   : > { %889 = shalt.err (!%p886_p2)
}
 0x4a6   : > { %s946_s7 = smov [#allocation9]  }
 0x4a7   : > { %722 = dma.smem_to_hbm (%p739_p8), %s946_s7, 16, %s1246_s6, [#allocation5]  }
 0x4a8   : > { %919 = dma.done.wait (%p739_p8), [#allocation5], 16  }
 0x4a9   : > { %921 = vsyncadd (%p739_p8), [#allocation5], 4294967280 }
 0x4aa   : > { %543 = sfence }
 0x4ab PF: > { %p20_p6 = scmp.ge.s32.totalorder %s1004_s26, 6   ;;  %s1262_s21 = smov %s928_s22 }
 0x4ac   : > { %s1263_s22 = smov %s932_s23  ;;  %s1264_s23 = smov %s1014_s29 }
 0x4ad   : > { %s1265_s24 = smov %s1004_s26  ;;  %22 = sbr.rel (!%p20_p6) target bundleno = 6 (0x6), region = 107 }
 0x4b4   :  { %549 = vsyncpa [#allocation4], 1 }
 0x4b5   :  { %551 = vsyncpa [#allocation4 + $0x1], 1 }
 0x4b6   :  { %552 = vsyncpa [#allocation7], 1 }
 0x4b7   :  { %554 = vsyncpa [#allocation7 + $0x1], 1 }
 0x4b8   :  { %555 = vsyncpa [#allocation5], 1 }
 0x4b9   :  { %557 = vsyncpa [#allocation5 + $0x1], 1 }

</bundles_post_ra>
